<compile_context>
chip_gen: v5e
topology: v5e:2x2
jax: 0.10.0
libtpu: 0.0.40
codegen_flags: <defaults>
</compile_context>

<pallas_src>
import functools

import jax
import jax.numpy as jnp
from jax.experimental import pallas as pl
from jax.experimental.pallas import tpu as pltpu

LANE = 128


# ----------------------------------------------------------------------------------
# Binary (C == 2) fast path: interleaved lane layout, no wrapper transpose.
# ----------------------------------------------------------------------------------
def _binary_ce_kernel(x_ref, t_ref, w_ref, out_ref, *, total_rows):
    """x_ref: (rows, 128) logits in natural interleaved layout (native dtype).
    t_ref: (rows, 128) int8 labels duplicated onto both lanes of a pair; -1 = pad.
    w_ref: (2,) f32 class weights in SMEM.
    out_ref: (1, 8, 128) f32 per-tile partials (row 0 = weighted NLL sum, row 1 = weight sum).
    """
    i = pl.program_id(0)
    rows = x_ref.shape[0]
    shape = (rows, LANE)

    x = x_ref[...].astype(jnp.float32)
    t = t_ref[...].astype(jnp.int32)

    # Mask out-of-bounds rows of a partial last grid block (they contain garbage).
    row_id = jax.lax.broadcasted_iota(jnp.int32, shape, 0) + i * rows
    valid = row_id < total_rows
    x = jnp.where(valid, x, 0.0)
    t = jnp.where(valid, t, -1)

    # Partner logit of every lane via an exact MXU pair-swap permutation
    # (perm[l, m] = 1 iff l == m ^ 1).  x is split into three bf16 terms so the
    # native bf16 MXU path reconstructs the f32 value exactly (each output picks a
    # single product, no accumulation error).  MXU is otherwise idle here.
    # TODO(synk): a pltpu.roll-based swizzle on the XLU would avoid the MXU entirely.
    l_idx = jax.lax.broadcasted_iota(jnp.int32, (LANE, LANE), 0)
    m_idx = jax.lax.broadcasted_iota(jnp.int32, (LANE, LANE), 1)
    perm = (l_idx == jnp.bitwise_xor(m_idx, 1)).astype(jnp.float32).astype(jnp.bfloat16)
    h1 = x.astype(jnp.bfloat16)
    r1 = x - h1.astype(jnp.float32)
    h2 = r1.astype(jnp.bfloat16)
    h3 = (r1 - h2.astype(jnp.float32)).astype(jnp.bfloat16)
    partner = (jnp.dot(h1, perm, preferred_element_type=jnp.float32)
               + jnp.dot(h2, perm, preferred_element_type=jnp.float32)
               + jnp.dot(h3, perm, preferred_element_type=jnp.float32))

    # Binary log-sum-exp, identical at both lanes of a pair (EUP exp/log only).
    a = x
    b = partner
    mx = jnp.maximum(a, b)
    lse = mx + jnp.log1p(jnp.exp(-jnp.abs(a - b)))

    # A lane "owns" its sample iff its parity equals the label; at the owning lane
    # a == x[y_i], so (lse - a) is that sample's -log softmax[target].
    parity = jnp.bitwise_and(jax.lax.broadcasted_iota(jnp.int32, shape, 1), 1)
    own = t == parity                      # never true for the -1 pad sentinel
    w0 = w_ref[0]
    w1 = w_ref[1]
    wt = jnp.where(own, jnp.where(t == 0, w0, w1), 0.0)
    num = jnp.sum(wt * (lse - a))
    den = jnp.sum(wt)

    out_row = jax.lax.broadcasted_iota(jnp.int32, out_ref.shape, 1)
    out_ref[...] = jnp.where(out_row == 0, num, jnp.where(out_row == 1, den, 0.0))


def _binary_weighted_ce(predict, target, weights, tile_rows):
    n = predict.shape[0]
    flat = predict.reshape(-1)                         # (2N,) - free for compact layouts
    length = 2 * n
    total_rows_raw = max(1, -(-length // LANE))

    if total_rows_raw <= tile_rows:
        total_rows = -(-total_rows_raw // 8) * 8       # single full block, 8-aligned rows
        block_rows = total_rows
        num_tiles = 1
    else:
        total_rows = total_rows_raw                    # no row padding for large N
        block_rows = tile_rows                         # multiple of 8
        num_tiles = -(-total_rows // block_rows)       # uneven last block masked in-kernel

    padded_len = total_rows * LANE
    pad = padded_len - length
    if pad:                                            # copy only when N % 64 != 0 or N tiny
        flat = jnp.pad(flat, (0, pad))
    x2d = flat.reshape(total_rows, LANE)

    # Tiny target stream: int8, label duplicated onto both lanes of its pair, -1 = pad.
    t = jnp.repeat(target.astype(jnp.int8), 2)
    if pad:
        t = jnp.pad(t, (0, pad), constant_values=-1)
    t2d = t.reshape(total_rows, LANE)

    partials = pl.pallas_call(
        functools.partial(_binary_ce_kernel, total_rows=total_rows),
        out_shape=jax.ShapeDtypeStruct((num_tiles, 8, LANE), jnp.float32),
        grid=(num_tiles,),
        in_specs=[
            pl.BlockSpec((block_rows, LANE), lambda i: (i, 0)),          # logits tile
            pl.BlockSpec((block_rows, LANE), lambda i: (i, 0)),          # int8 labels tile
            pl.BlockSpec(memory_space=pltpu.MemorySpace.SMEM),           # (2,) weights
        ],
        out_specs=pl.BlockSpec((1, 8, LANE), lambda i: (i, 0, 0)),       # per-tile partials
        compiler_params=pltpu.CompilerParams(
            dimension_semantics=("parallel",),         # independent partials: 2 TCs on v7x
            vmem_limit_bytes=32 * 1024 * 1024,         # safe on v5e/v6e/v7x
        ),
    )(x2d, t2d, weights)

    sums = jnp.sum(partials[:, :2, 0], axis=0)         # tiny XLA epilogue: [num, den]
    return sums[0] / sums[1]


# ----------------------------------------------------------------------------------
# General small-C fallback (RawNet2 itself is binary): transposed lane-dense layout.
# ----------------------------------------------------------------------------------
def _general_ce_kernel(pred_ref, tgt_ref, w_ref, out_ref, acc_ref):
    i = pl.program_id(0)

    @pl.when(i == 0)
    def _init():
        acc_ref[0] = 0.0
        acc_ref[1] = 0.0

    x = pred_ref[...].astype(jnp.float32)              # (C, T) logits
    tgt = tgt_ref[...]                                 # (1, T) int32, -1 == padding
    w = w_ref[...]                                     # (C, 1) f32

    m = jnp.max(x, axis=0, keepdims=True)
    lse = m + jnp.log(jnp.sum(jnp.exp(x - m), axis=0, keepdims=True))
    logp = x - lse
    onehot = jax.lax.broadcasted_iota(jnp.int32, x.shape, 0) == tgt
    pw = onehot.astype(jnp.float32) * w
    acc_ref[0] += jnp.sum(pw * (-logp))
    acc_ref[1] += jnp.sum(pw)

    @pl.when(i == pl.num_programs(0) - 1)
    def _finalize():
        out_ref[0, 0] = acc_ref[0] / acc_ref[1]        # NaN if den == 0, like torch


def _general_weighted_ce(predict, target, weights, tile_n):
    n, c = predict.shape
    # Cap so double-buffered (C, tile_n) f32 blocks stay well under the VMEM limit.
    cap = max(LANE, (4 * 1024 * 1024 // (4 * c)) // LANE * LANE)
    tile_n = max(LANE, min(tile_n, cap, ((n + LANE - 1) // LANE) * LANE))
    num_tiles = -(-n // tile_n)
    n_pad = num_tiles * tile_n

    pred_t = jnp.pad(jnp.transpose(predict), ((0, 0), (0, n_pad - n)))
    tgt = jnp.pad(target.astype(jnp.int32), (0, n_pad - n), constant_values=-1)
    tgt = tgt.reshape(1, n_pad)
    w = weights.reshape(c, 1)

    out = pl.pallas_call(
        _general_ce_kernel,
        out_shape=jax.ShapeDtypeStruct((1, 1), jnp.float32),
        grid=(num_tiles,),
        in_specs=[
            pl.BlockSpec((c, tile_n), lambda i: (0, i)),
            pl.BlockSpec((1, tile_n), lambda i: (0, i)),
            pl.BlockSpec((c, 1), lambda i: (0, 0)),
        ],
        out_specs=pl.BlockSpec(memory_space=pltpu.MemorySpace.SMEM),
        scratch_shapes=[pltpu.SMEM((2,), jnp.float32)],
        compiler_params=pltpu.CompilerParams(
            dimension_semantics=("arbitrary",),
            vmem_limit_bytes=32 * 1024 * 1024,
        ),
    )(pred_t, tgt, w)
    return out[0, 0]


# ----------------------------------------------------------------------------------
# Public entry point (forward of RawNet2Loss).
# ----------------------------------------------------------------------------------
def rawnet2_loss(predict, target, class_weights, *, tile_rows=2048, tile_n=32768):
    """predict: (N, C) logits (any float dtype); target: (N,) int; class_weights: (C,)."""
    weights = jnp.asarray(class_weights, jnp.float32)
    c = predict.shape[1]
    if c == 2:
        tile_rows = max(8, (int(tile_rows) // 8) * 8)
        return _binary_weighted_ce(predict, target, weights, tile_rows)
    return _general_weighted_ce(predict, target, weights, tile_n)


def _ref_loss(predict, target, class_weights):
    logp = jax.nn.log_softmax(predict.astype(jnp.float32), axis=-1)
    picked = -logp[jnp.arange(predict.shape[0]), target]
    wi = jnp.asarray(class_weights, jnp.float32)[target]
    return jnp.sum(wi * picked) / jnp.sum(wi)


if __name__ == "__main__":
    key = jax.random.PRNGKey(0)
    k1, k2, k3, k4, k5, k6 = jax.random.split(key, 6)

    # 1) RawNet2 case: 2 classes (bonafide / spoof), tiny batch.
    n1, c1 = 8, 2
    predict1 = jax.random.normal(k1, (n1, c1), dtype=jnp.float32)
    target1 = jax.random.randint(k2, (n1,), 0, c1, dtype=jnp.int32)
    w_bin = jnp.array([1.0, 9.0], dtype=jnp.float32)
    out1 = rawnet2_loss(predict1, target1, w_bin)
    jax.block_until_ready(out1)
    ref1 = _ref_loss(predict1, target1, w_bin)
    assert jnp.allclose(out1, ref1, atol=1e-5, rtol=1e-5), (out1, ref1)

    # 2) Multi-tile binary path with an uneven last block (copy-free reshape path).
    n2 = 4160                                  # multiple of 64 -> no wrapper pad / copy
    predict2 = jax.random.normal(k3, (n2, 2), dtype=jnp.float32)
    target2 = jax.random.randint(k4, (n2,), 0, 2, dtype=jnp.int32)
    out2 = rawnet2_loss(predict2, target2, w_bin, tile_rows=16)
    jax.block_until_ready(out2)
    ref2 = _ref_loss(predict2, target2, w_bin)
    assert jnp.allclose(out2, ref2, atol=1e-5, rtol=1e-5), (out2, ref2)

    # 3) bf16 logits, N not a multiple of 64 (exercises the pad fallback + in-kernel upcast).
    n3 = 37
    predict3 = jax.random.normal(k5, (n3, 2), dtype=jnp.float32).astype(jnp.bfloat16)
    target3 = jax.random.randint(k6, (n3,), 0, 2, dtype=jnp.int32)
    out3 = rawnet2_loss(predict3, target3, w_bin)
    jax.block_until_ready(out3)
    ref3 = _ref_loss(predict3, target3, w_bin)  # same bf16-rounded logits -> tight match
    assert jnp.allclose(out3, ref3, atol=1e-5, rtol=1e-5), (out3, ref3)

    # 4) General small-C fallback path.
    n4, c4 = 20, 4
    predict4 = jax.random.normal(k1, (n4, c4), dtype=jnp.float32)
    target4 = jax.random.randint(k2, (n4,), 0, c4, dtype=jnp.int32)
    w4 = jnp.array([1.0, 2.0, 0.5, 4.0], dtype=jnp.float32)
    out4 = rawnet2_loss(predict4, target4, w4)
    jax.block_until_ready(out4)
    ref4 = _ref_loss(predict4, target4, w4)
    assert jnp.allclose(out4, ref4, atol=1e-5, rtol=1e-5), (out4, ref4)

    print("KERNEL_OK")
</pallas_src>

<mosaic_0001>
module attributes {stable_mosaic.version = 11 : i64} {
  func.func @_binary_ce_kernel(%arg0: i32, %arg1: memref<8x128xf32, #tpu.memory_space<vmem>>, %arg2: memref<8x128xi8, #tpu.memory_space<vmem>>, %arg3: memref<2xf32, #tpu.memory_space<smem>>, %arg4: memref<1x8x128xf32, #tpu.memory_space<vmem>>) attributes {dimension_semantics = [#tpu.dimension_semantics<parallel>], iteration_bounds = array<i64: 1>, scalar_prefetch = 0 : i64, scratch_operands = 0 : i64, tpu.core_type = #tpu.core_type<tc>, window_params = [{transform_indices = @transform_0, window_bounds = array<i64: 8, 128>}, {transform_indices = @transform_1, window_bounds = array<i64: 8, 128>}, {transform_indices = @transform_2, window_bounds = array<i64: 2>}, {transform_indices = @transform_3, window_bounds = array<i64: 1, 8, 128>}]} {
    %c0 = arith.constant 0 : index
    %c0_0 = arith.constant 0 : index
    %0 = vector.load %arg1[%c0, %c0_0] : memref<8x128xf32, #tpu.memory_space<vmem>>, vector<8x128xf32>
    %c0_1 = arith.constant 0 : index
    %c0_2 = arith.constant 0 : index
    %1 = vector.load %arg2[%c0_1, %c0_2] : memref<8x128xi8, #tpu.memory_space<vmem>>, vector<8x128xi8>
    %2 = arith.extsi %1 : vector<8x128xi8> to vector<8x128xi32>
    %3 = tpu.iota {dimensions = array<i32: 0>} : vector<8x128xi32>
    %c8_i32 = arith.constant 8 : i32
    %4 = arith.muli %arg0, %c8_i32 : i32
    %5 = vector.broadcast %4 : i32 to vector<8x128xi32>
    %6 = arith.addi %3, %5 : vector<8x128xi32>
    %c8_i32_3 = arith.constant 8 : i32
    %7 = vector.broadcast %c8_i32_3 : i32 to vector<8x128xi32>
    %8 = arith.cmpi slt, %6, %7 : vector<8x128xi32>
    %cst = arith.constant 0.000000e+00 : f32
    %9 = vector.broadcast %cst : f32 to vector<8x128xf32>
    %10 = arith.select %8, %0, %9 : vector<8x128xi1>, vector<8x128xf32>
    %c-1_i32 = arith.constant -1 : i32
    %11 = vector.broadcast %c-1_i32 : i32 to vector<8x128xi32>
    %12 = arith.select %8, %2, %11 : vector<8x128xi1>, vector<8x128xi32>
    %13 = tpu.iota {dimensions = array<i32: 0>} : vector<128x128xi32>
    %14 = tpu.iota {dimensions = array<i32: 1>} : vector<128x128xi32>
    %c1_i32 = arith.constant 1 : i32
    %15 = vector.broadcast %c1_i32 : i32 to vector<128x128xi32>
    %16 = arith.xori %14, %15 : vector<128x128xi32>
    %17 = arith.cmpi eq, %13, %16 : vector<128x128xi32>
    %18 = arith.extui %17 : vector<128x128xi1> to vector<128x128xi32>
    %19 = arith.sitofp %18 : vector<128x128xi32> to vector<128x128xf32>
    %20 = arith.truncf %19 : vector<128x128xf32> to vector<128x128xbf16>
    %21 = arith.truncf %10 : vector<8x128xf32> to vector<8x128xbf16>
    %22 = arith.extf %21 : vector<8x128xbf16> to vector<8x128xf32>
    %23 = arith.subf %10, %22 : vector<8x128xf32>
    %24 = arith.truncf %23 : vector<8x128xf32> to vector<8x128xbf16>
    %25 = arith.extf %24 : vector<8x128xbf16> to vector<8x128xf32>
    %26 = arith.subf %23, %25 : vector<8x128xf32>
    %27 = arith.truncf %26 : vector<8x128xf32> to vector<8x128xbf16>
    %cst_4 = arith.constant dense<0.000000e+00> : vector<8x128xf32>
    %28 = tpu.matmul %21, %20, %cst_4 {dimension_numbers = #tpu.dot_dimension_numbers<[1], [0], [0], [1], [0, 0, 1, 1], [], []>} : vector<8x128xbf16>, vector<128x128xbf16>, vector<8x128xf32> -> vector<8x128xf32>
    %cst_5 = arith.constant dense<0.000000e+00> : vector<8x128xf32>
    %29 = tpu.matmul %24, %20, %cst_5 {dimension_numbers = #tpu.dot_dimension_numbers<[1], [0], [0], [1], [0, 0, 1, 1], [], []>} : vector<8x128xbf16>, vector<128x128xbf16>, vector<8x128xf32> -> vector<8x128xf32>
    %30 = arith.addf %28, %29 : vector<8x128xf32>
    %cst_6 = arith.constant dense<0.000000e+00> : vector<8x128xf32>
    %31 = tpu.matmul %27, %20, %cst_6 {dimension_numbers = #tpu.dot_dimension_numbers<[1], [0], [0], [1], [0, 0, 1, 1], [], []>} : vector<8x128xbf16>, vector<128x128xbf16>, vector<8x128xf32> -> vector<8x128xf32>
    %32 = arith.addf %30, %31 : vector<8x128xf32>
    %33 = arith.maximumf %10, %32 : vector<8x128xf32>
    %34 = arith.subf %10, %32 : vector<8x128xf32>
    %35 = math.absf %34 : vector<8x128xf32>
    %cst_7 = arith.constant 0.000000e+00 : f32
    %36 = vector.broadcast %cst_7 : f32 to vector<8x128xf32>
    %37 = arith.subf %36, %35 : vector<8x128xf32>
    %38 = math.exp %37 : vector<8x128xf32>
    %39 = math.log1p %38 : vector<8x128xf32>
    %40 = arith.addf %33, %39 : vector<8x128xf32>
    %41 = tpu.iota {dimensions = array<i32: 1>} : vector<8x128xi32>
    %c1_i32_8 = arith.constant 1 : i32
    %42 = vector.broadcast %c1_i32_8 : i32 to vector<8x128xi32>
    %43 = arith.andi %41, %42 : vector<8x128xi32>
    %44 = arith.cmpi eq, %12, %43 : vector<8x128xi32>
    %c0_9 = arith.constant 0 : index
    %45 = memref.load %arg3[%c0_9] : memref<2xf32, #tpu.memory_space<smem>>
    %c1 = arith.constant 1 : index
    %46 = memref.load %arg3[%c1] : memref<2xf32, #tpu.memory_space<smem>>
    %c0_i32 = arith.constant 0 : i32
    %47 = vector.broadcast %c0_i32 : i32 to vector<8x128xi32>
    %48 = arith.cmpi eq, %12, %47 : vector<8x128xi32>
    %49 = vector.broadcast %45 : f32 to vector<8x128xf32>
    %50 = vector.broadcast %46 : f32 to vector<8x128xf32>
    %51 = arith.select %48, %49, %50 : vector<8x128xi1>, vector<8x128xf32>
    %cst_10 = arith.constant 0.000000e+00 : f32
    %52 = vector.broadcast %cst_10 : f32 to vector<8x128xf32>
    %53 = arith.select %44, %51, %52 : vector<8x128xi1>, vector<8x128xf32>
    %54 = arith.subf %40, %10 : vector<8x128xf32>
    %55 = arith.mulf %53, %54 : vector<8x128xf32>
    %56 = vector.shape_cast %55 : vector<8x128xf32> to vector<1x8x128xf32>
    %cst_11 = arith.constant dense<0.000000e+00> : vector<1xf32>
    %57 = vector.multi_reduction <add>, %56, %cst_11 [1, 2] : vector<1x8x128xf32> to vector<1xf32>
    %58 = vector.shape_cast %57 : vector<1xf32> to vector<1x1x1xf32>
    %59 = vector.extract %58[0, 0, 0] : f32 from vector<1x1x1xf32>
    %60 = vector.shape_cast %53 : vector<8x128xf32> to vector<1x8x128xf32>
    %cst_12 = arith.constant dense<0.000000e+00> : vector<1xf32>
    %61 = vector.multi_reduction <add>, %60, %cst_12 [1, 2] : vector<1x8x128xf32> to vector<1xf32>
    %62 = vector.shape_cast %61 : vector<1xf32> to vector<1x1x1xf32>
    %63 = vector.extract %62[0, 0, 0] : f32 from vector<1x1x1xf32>
    %64 = tpu.iota {dimensions = array<i32: 1>} : vector<1x8x128xi32>
    %c0_i32_13 = arith.constant 0 : i32
    %65 = vector.broadcast %c0_i32_13 : i32 to vector<1x8x128xi32>
    %66 = arith.cmpi eq, %64, %65 : vector<1x8x128xi32>
    %c1_i32_14 = arith.constant 1 : i32
    %67 = vector.broadcast %c1_i32_14 : i32 to vector<1x8x128xi32>
    %68 = arith.cmpi eq, %64, %67 : vector<1x8x128xi32>
    %cst_15 = arith.constant 0.000000e+00 : f32
    %69 = vector.broadcast %63 : f32 to vector<1x8x128xf32>
    %70 = vector.broadcast %cst_15 : f32 to vector<1x8x128xf32>
    %71 = arith.select %68, %69, %70 : vector<1x8x128xi1>, vector<1x8x128xf32>
    %72 = vector.broadcast %59 : f32 to vector<1x8x128xf32>
    %73 = arith.select %66, %72, %71 : vector<1x8x128xi1>, vector<1x8x128xf32>
    %c0_16 = arith.constant 0 : index
    %c0_17 = arith.constant 0 : index
    %c0_18 = arith.constant 0 : index
    %74 = vector.load %arg4[%c0_16, %c0_17, %c0_18] : memref<1x8x128xf32, #tpu.memory_space<vmem>>, vector<1x8x128xf32>
    tpu.vector_store %arg4[%c0_16, %c0_17, %c0_18], %73 {strides = array<i32>} : memref<1x8x128xf32, #tpu.memory_space<vmem>>, vector<1x8x128xf32>,
    return
  }
  func.func @transform_0(%arg0: i32) -> (i32, i32) {
    %c0_i32 = arith.constant 0 : i32
    %c0_i32_0 = arith.constant 0 : i32
    return %arg0, %c0_i32 : i32, i32
  }
  func.func @transform_1(%arg0: i32) -> (i32, i32) {
    %c0_i32 = arith.constant 0 : i32
    %c0_i32_0 = arith.constant 0 : i32
    return %arg0, %c0_i32 : i32, i32
  }
  func.func @transform_2(%arg0: i32) -> i32 {
    %c0_i32 = arith.constant 0 : i32
    %c0_i32_0 = arith.constant 0 : i32
    return %c0_i32 : i32
  }
  func.func @transform_3(%arg0: i32) -> (i32, i32, i32) {
    %c0_i32 = arith.constant 0 : i32
    %c0_i32_0 = arith.constant 0 : i32
    %c0_i32_1 = arith.constant 0 : i32
    return %arg0, %c0_i32, %c0_i32_0 : i32, i32, i32
  }
}

</mosaic_0001>

<bundles_post_ra>
// kernel: tpu_custom_call.1
= control target key start
LH: loop header
LB: loop body
LE: loop exit
PB: predicated region body
PF: predicated region fallthrough
CT: control target
= control target key end

     0   :  { %8 = vsyncpa [#allocation3], 0  ;;  %s516_s0 = inlined_call_operand.hbm [shape: f32[8,128], index: 0, kind: input, shape index: {}]   ;;  %s517_s1 = inlined_call_operand.hbm [shape: s8[8,128], index: 1, kind: input, shape index: {}]   ;;  %s518_s2 = inlined_call_operand.vmem [shape: f32[2], index: 2, kind: input, shape index: {}]   ;;  %s519_s3 = inlined_call_operand.hbm [shape: f32[1,8,128], index: 3, kind: output, shape index: {}]  }
   0x1   :  { %9 = vsyncpa [#allocation7], 0 }
   0x2   :  { %10 = vsyncpa [#allocation5], 0 }
   0x3   :  { %11 = vsyncpa [#allocation4], 0  ;;  %s17_s14 = sshll.u32 %s516_s0, 4  ;;  %s429_s15 = smov [#allocation2]   ;;  %s18_s14 = int_to_ptr.hbm [resolvable:$true] %s17_s14 }
   0x4   :  { %s19_s16 = sshll.u32 %s429_s15, 4  ;;  %s28_s19 = sshll.u32 %s517_s1, 4  ;;  %s20_s16 = int_to_ptr.vmem [resolvable:$true] %s19_s16  ;;  %s29_s19 = int_to_ptr.hbm [resolvable:$true] %s28_s19 }
   0x5   :  { %22 = dma.hbm_to_vmem [thread:$0]  %s18_s14, 128, %s20_s16, [#allocation3]  }
   0x6   :  { %s430_s20 = smov [#allocation6]   ;;  %s39_s24 = sshll.u32 %s518_s2, 4  ;;  %s40_s24 = int_to_ptr.vmem [resolvable:$true] %s39_s24 }
   0x7   :  { %s30_s21 = sshll.u32 %s430_s20, 4  ;;  %s431_s0 = smov [#allocation8]   ;;  %s31_s21 = int_to_ptr.vmem [resolvable:$true] %s30_s21 }
   0x8   :  { %33 = dma.hbm_to_vmem [thread:$0]  %s29_s19, 32, %s31_s21, [#allocation7]  }
   0x9   :  { %42 = dma.vmem_to_smem %s40_s24, 16, %s431_s0, [#allocation5]  }
   0xa   :  { %421 = dma.done.wait [#allocation3], 128  }
   0xb   :  { %422 = vsyncadd [#allocation3], 4294967168 }
   0xc   :  { %423 = dma.done.wait [#allocation7], 32  }
   0xd   :  { %424 = vsyncadd [#allocation7], 4294967264 }
   0xe   :  { %425 = dma.done.wait [#allocation5], 16  }
   0xf   :  { %426 = vsyncadd [#allocation5], 4294967280 }
  0x10   :  { %55 = sfence }
  0x11   :  { %v59_v0 = vlaneseq  ;;  %v432_v10 = vmov 1.0|1.0   ;;  %v480_v11 = vld [vmem:[#allocation2] sm:$0xff]  ;;  %s206_s1 = sld [smem:[#allocation8]]  ;;  %v57_v41 = vld [vmem:[#allocation6] sm:$0x3] }
  0x12   :  { %v141_v14 = vpack.c.bf16 %v480_v11, %v480_v11  ;;  %s323_s2 = sld [smem:[#allocation8 + $0x1]]  ;;  %v58_v44 = vunpack.c.0.s8 %v57_v41  ;;  %s433_s25 = smov [#allocation9]  }
  0x13   :  { %v463_v1 = vshrl.u32 %v59_v0, 7  ;;  %v465_v2 = vand.u32 127, %v59_v0  ;;  %s245_s26 = sshll.u32 %s433_s25, 4  ;;  %s247_s30 = sshll.u32 %s519_s3, 4  ;;  %s246_s26 = int_to_ptr.vmem [resolvable:$true] %s245_s26  ;;  %s248_s30 = int_to_ptr.hbm [resolvable:$true] %s247_s30 }
  0x14   :  { %v142_v17 = vunpack.c.l.bf16 %v141_v14 }
  0x15   :  { %v80_v3 = vadd.s32 112, %v463_v1  ;;  %v81_v4 = vadd.s32 120, %v463_v1  ;;  %v470_v5 = vxor.u32 1, %v465_v2  ;;  %v78_v6 = vadd.s32 96, %v463_v1 }
  0x16   :  { %v79_v7 = vadd.s32 104, %v463_v1  ;;  %v76_v8 = vadd.s32 80, %v463_v1  ;;  %v77_v9 = vadd.s32 88, %v463_v1  ;;  %v74_v12 = vadd.s32 64, %v463_v1 }
  0x17   :  { %vm99_vm0 = vcmp.eq.s32.totalorder %v80_v3, %v470_v5  ;;  %vm100_vm1 = vcmp.eq.s32.totalorder %v81_v4, %v470_v5  ;;  %vm97_vm2 = vcmp.eq.s32.totalorder %v78_v6, %v470_v5  ;;  %v75_v13 = vadd.s32 72, %v463_v1 }
  0x18   :  { %vm275_vm3 = vmpackc.low %vm100_vm1, %vm99_vm0  ;;  %vm98_vm4 = vcmp.eq.s32.totalorder %v79_v7, %v470_v5  ;;  %vm95_vm6 = vcmp.eq.s32.totalorder %v76_v8, %v470_v5  ;;  %vm96_vm7 = vcmp.eq.s32.totalorder %v77_v9, %v470_v5  ;;  %vm93_vm9 = vcmp.eq.s32.totalorder %v74_v12, %v470_v5 }
  0x19   :  { %276 = vmatpush.bf16.msk.msra.mxu0 %vm275_vm3, %v432_v10  ;;  %292 = vmatpush.bf16.msk.msra.mxu1 %vm275_vm3, %v432_v10  ;;  %vm277_vm5 = vmpackc.low %vm98_vm4, %vm97_vm2  ;;  %vm94_vm10 = vcmp.eq.s32.totalorder %v75_v13, %v470_v5  ;;  %v72_v15 = vadd.s32 48, %v463_v1  ;;  %v73_v16 = vadd.s32 56, %v463_v1  ;;  %v70_v18 = vadd.s32 32, %v463_v1 }
  0x1a   :  { %308 = vmatpush.bf16.msk.msra.mxu2 %vm275_vm3, %v432_v10  ;;  %vm279_vm8 = vmpackc.low %vm96_vm7, %vm95_vm6  ;;  %v71_v19 = vadd.s32 40, %v463_v1  ;;  %v143_v20 = vsub.f32 %v480_v11, %v142_v17  ;;  %v68_v21 = vadd.s32 16, %v463_v1  ;;  %v69_v22 = vadd.s32 24, %v463_v1 }
  0x1b   :  { %vm281_vm11 = vmpackc.low %vm94_vm10, %vm93_vm9  ;;  %vm91_vm12 = vcmp.eq.s32.totalorder %v72_v15, %v470_v5  ;;  %vm92_vm13 = vcmp.eq.s32.totalorder %v73_v16, %v470_v5  ;;  %vm89_vm15 = vcmp.eq.s32.totalorder %v70_v18, %v470_v5  ;;  %v67_v24 = vadd.s32 8, %v463_v1 }
  0x1c   :  { %vm283_vm14 = vmpackc.low %vm92_vm13, %vm91_vm12  ;;  %vm90_vm0 = vcmp.eq.s32.totalorder %v71_v19, %v470_v5  ;;  %v144_v23 = vpack.c.bf16 %v143_v20, %v143_v20  ;;  %vm87_vm2 = vcmp.eq.s32.totalorder %v68_v21, %v470_v5  ;;  %vm88_vm3 = vcmp.eq.s32.totalorder %v69_v22, %v470_v5 }
  0x1d   :  { %278 = vmatpush.bf16.msk.msra.mxu0 %vm277_vm5, %v432_v10  ;;  %294 = vmatpush.bf16.msk.msra.mxu1 %vm277_vm5, %v432_v10  ;;  %vm285_vm1 = vmpackc.low %vm90_vm0, %vm89_vm15  ;;  %vm86_vm6 = vcmp.eq.s32.totalorder %v67_v24, %v470_v5  ;;  %v204_v47 = vand.u32 1, %v465_v2  ;;  %v209_v48 = vstv %s206_s1  ;;  %v210_v49 = vstv %s323_s2 }
  0x1e   :  { %310 = vmatpush.bf16.msk.msra.mxu2 %vm277_vm5, %v432_v10  ;;  %v145_v25 = vunpack.c.l.bf16 %v144_v23  ;;  %vm287_vm4 = vmpackc.low %vm88_vm3, %vm87_vm2  ;;  %vm85_vm5 = vcmp.eq.s32.totalorder %v463_v1, %v470_v5  ;;  %vm233_vm12 = vcmp.eq.s32.totalorder %v463_v1, 0 }
  0x1f   :  { %vm289_vm7 = vmpackc.low %vm86_vm6, %vm85_vm5  ;;  %vm205_vm10 = vcmp.eq.s32.totalorder %v58_v44, %v204_v47 }
  0x20   :  { %v146_v26 = vsub.f32 %v143_v20, %v145_v25 }
  0x21   :  { %280 = vmatpush.bf16.msk.msra.mxu0 %vm279_vm8, %v432_v10  ;;  %296 = vmatpush.bf16.msk.msra.mxu1 %vm279_vm8, %v432_v10 }
  0x22   :  { %312 = vmatpush.bf16.msk.msra.mxu2 %vm279_vm8, %v432_v10  ;;  %v147_v27 = vpack.c.bf16 %v146_v26, %v146_v26  ;;  %vm208_vm8 = vcmp.eq.s32.totalorder %v58_v44, 0 }
  0x23   :  { %v211_v54 = vsel %vm208_vm8, %v209_v48, %v210_v49 }
  0x24   :  { %v212_v57 = vsel %vm205_vm10, %v211_v54, 0.0 }
  0x25   :  { %282 = vmatpush.bf16.msk.msra.mxu0 %vm281_vm11, %v432_v10  ;;  %298 = vmatpush.bf16.msk.msra.mxu1 %vm281_vm11, %v432_v10 }
  0x26   :  { %314 = vmatpush.bf16.msk.msra.mxu2 %vm281_vm11, %v432_v10  ;;  %vm234_vm11 = vcmp.eq.s32.totalorder %v463_v1, 1 }
  0x29   :  { %284 = vmatpush.bf16.msk.msra.mxu0 %vm283_vm14, %v432_v10  ;;  %300 = vmatpush.bf16.msk.msra.mxu1 %vm283_vm14, %v432_v10 }
  0x2a   :  { %316 = vmatpush.bf16.msk.msra.mxu2 %vm283_vm14, %v432_v10 }
  0x2d   :  { %286 = vmatpush.bf16.msk.msra.mxu0 %vm285_vm1, %v432_v10  ;;  %302 = vmatpush.bf16.msk.msra.mxu1 %vm285_vm1, %v432_v10 }
  0x2e   :  { %318 = vmatpush.bf16.msk.msra.mxu2 %vm285_vm1, %v432_v10 }
  0x31   :  { %288 = vmatpush.bf16.msk.msra.mxu0 %vm287_vm4, %v432_v10  ;;  %304 = vmatpush.bf16.msk.msra.mxu1 %vm287_vm4, %v432_v10 }
  0x32   :  { %320 = vmatpush.bf16.msk.msra.mxu2 %vm287_vm4, %v432_v10 }
  0x35   :  { %290 = vmatpush.bf16.msk.msra.mxu0 %vm289_vm7, %v432_v10  ;;  %306 = vmatpush.bf16.msk.msra.mxu1 %vm289_vm7, %v432_v10 }
  0x36   :  { %322 = vmatpush.bf16.msk.msra.mxu2 %vm289_vm7, %v432_v10 }
  0x38   :  { %156 = vmatmul.bf16.vlgmr.msra.gmra.mxu0 %v144_v23  ;;  %169 = vmatmul.bf16.vlgmr.msra.gmra.mxu1 %v141_v14 }
  0x39   :  { %182 = vmatmul.bf16.vlgmr.msra.gmra.mxu2 %v147_v27 }
  0xb5   :  { %v157_v28 = vpop.f32.mrf.mxu0  ;;  %v170_v29 = vpop.f32.mrf.mxu1 }
  0xb6   :  { %v171_v30 = vadd.f32 %v170_v29, %v157_v28 }
  0xbc   :  { %v183_v31 = vpop.f32.mrf.mxu2 }
  0xbd   :  { %v187_v32 = vadd.f32 %v183_v31, %v171_v30  ;;  %v159_v33 = vpop.f32.mrf.mxu0  ;;  %v172_v34 = vpop.f32.mrf.mxu1 }
  0xbf   :  { %v189_v35 = vsub.f32 %v480_v11, %v187_v32  ;;  %v188_v53 = vmax.f32 %v480_v11, %v187_v32 }
  0xc1   :  { %v190_v36 = vand.u32 2147483647, %v189_v35 }
  0xc3   :  { %v191_v37 = vsub.f32 0.0, %v190_v36 }
  0xc4   :  { %v185_v38 = vpop.f32.mrf.mxu2 }
  0xc5   :  { %v192_v39 = vmul.f32 1.442695, %v191_v37 }
  0xc7   :  { %333 = vpow2.f32 %v192_v39 }
  0xcd   :  { %v334_v40 = vpop.eup %333 }
  0xce   :  { %v194_v42 = vadd.f32 1.0, %v334_v40  ;;  %v197_v43 = vmul.f32 -0.5, %v334_v40  ;;  %v200_v46 = vand.u32 2147483647, %v334_v40 }
  0xd0   :  { %335 = vlog2.f32 %v194_v42  ;;  %v198_v45 = vadd.f32 1.0, %v197_v43  ;;  %vm201_vm9 = vcmp.lt.f32.partialorder %v200_v46, 0.0004427343 }
  0xd2   :  { %v199_v52 = vmul.f32 %v334_v40, %v198_v45 }
  0xd6   :  { %v336_v50 = vpop.eup %335 }
  0xd7   :  { %v196_v51 = vmul.f32 0.6931472, %v336_v50 }
  0xd9   :  { %v202_v55 = vsel %vm201_vm9, %v199_v52, %v196_v51 }
  0xda   :  { %v203_v56 = vadd.f32 %v202_v55, %v188_v53 }
  0xdc   :  { %v213_v58 = vsub.f32 %v203_v56, %v480_v11 }
  0xde   :  { %v214_v59 = vmul.f32 %v213_v58, %v212_v57 }
  0xe0   :  { %215 = vadd.xlane.f32.xlu0 %v214_v59 }
  0xe8   :  { %224 = vadd.xlane.f32.xlu0 %v212_v57 }
 0x153   :  { %v216_v60 = vpop.xlane.xlu0 %215 }
 0x154   :  { %v217_v61 = vrot.slane %v216_v60, 4 }
 0x156   :  { %v218_v62 = vadd.f32 %v217_v61, %v216_v60 }
 0x158   :  { %v219_v63 = vrot.slane %v218_v62, 2 }
 0x15a   :  { %v220_v0 = vadd.f32 %v219_v63, %v218_v62 }
 0x15b   :  { %v225_v2 = vpop.xlane.xlu0 %224 }
 0x15c   :  { %v226_v3 = vrot.slane %v225_v2, 4  ;;  %v221_v4 = vrot.slane %v220_v0, 1 }
 0x15e   :  { %v227_v5 = vadd.f32 %v226_v3, %v225_v2  ;;  %v222_v6 = vadd.f32 %v221_v4, %v220_v0 }
 0x160   :  { %v228_v7 = vrot.slane %v227_v5, 2  ;;  %324 = vpush %v222_v6 }
 0x162   :  { %v229_v8 = vadd.f32 %v228_v7, %v227_v5 }
 0x164   :  { %v230_v9 = vrot.slane %v229_v8, 1 }
 0x166   :  { %v231_v10 = vadd.f32 %v230_v9, %v229_v8 }
 0x168   :  { %326 = vpush %v231_v10 }
 0x191   :  { %s325_s27 = spop %324 }
 0x192   :  { %v237_v12 = vstv %s325_s27 }
 0x199   :  { %s327_s4 = spop %326 }
 0x19a   :  { %v235_v11 = vstv %s327_s4 }
 0x19b   :  { %v236_v13 = vsel %vm234_vm11, %v235_v11, 0.0 }
 0x19c   :  { %v238_v14 = vsel %vm233_vm12, %v237_v12, %v236_v13 }
 0x19d   :  { %239 = vst [vmem:[#allocation9] sm:$0xff] %v238_v14 }
 0x19e   :  { %250 = dma.vmem_to_hbm [thread:$0]  %s246_s26, 128, %s248_s30, [#allocation4]  }
 0x19f   :  { %427 = dma.done.wait [#allocation4], 128  }
 0x1a0   :  { %428 = vsyncadd [#allocation4], 4294967168 }
 0x1a1   :  { %255 = vsyncpa [#allocation3], 1 }
 0x1a2   :  { %256 = vsyncpa [#allocation7], 1 }
 0x1a3   :  { %257 = vsyncpa [#allocation4], 1 }
 0x1a4   :  { %258 = vsyncpa [#allocation5], 1 }

</bundles_post_ra>
